<compile_context>
chip_gen: v5e
topology: v5e:2x2
jax: 0.10.0
libtpu: 0.0.40
codegen_flags: <defaults>
</compile_context>

<pallas_src>
import jax
import jax.numpy as jnp
from jax.experimental import pallas as pl
from jax.experimental.pallas import tpu as pltpu


def _cdiv(a, b):
    return -(-a // b)


def _round_up(a, b):
    return _cdiv(a, b) * b


def _mish(x):
    # mish(x) = x * tanh(softplus(x)); single-exp form:
    #   tanh(log(1 + e^x)) = n / (n + 2),  n = e^x * (e^x + 2)
    # exp is clamped and a passthrough guard handles large x (tanh(softplus(x)) -> 1).
    e = jnp.exp(jnp.minimum(x, 20.0))
    n = e * (e + 2.0)
    t = n * pl.reciprocal(n + 2.0, approx=True)   # EUP vrcp, ~2^-12 rel error
    return jnp.where(x > 20.0, x, x * t)


def _mel_prenet_kernel(x_ref, w1_ref, w2_ref, o_ref):
    # x_ref : (TM, d_model)   unpadded row tile of flattened tokens
    # w1_ref: (d_model, d_mel) full weight of Linear #1 (no bias)
    # w2_ref: (d_mel, d_model) full weight of Linear #2 (no bias)
    x = x_ref[...]
    h = jnp.dot(x, w1_ref[...], preferred_element_type=jnp.float32)
    h = _mish(h)                                   # FCBlock 1: Linear -> Mish -> dropout(id)
    y = jnp.dot(h.astype(w2_ref.dtype), w2_ref[...],
                preferred_element_type=jnp.float32)
    y = _mish(y)                                   # FCBlock 2: Linear -> Mish -> dropout(id)
    o_ref[...] = y.astype(o_ref.dtype)


def _mel_prenet_kernel_masked(x_ref, w1_ref, w2_ref, keep_ref, o_ref):
    # keep_ref: (TM, 1) f32; 1.0 = keep row, 0.0 = masked row (masked_fill -> multiply)
    x = x_ref[...]
    h = jnp.dot(x, w1_ref[...], preferred_element_type=jnp.float32)
    h = _mish(h)
    y = jnp.dot(h.astype(w2_ref.dtype), w2_ref[...],
                preferred_element_type=jnp.float32)
    y = _mish(y)
    y = y * keep_ref[...]                          # x.masked_fill(mask.unsqueeze(-1), 0)
    o_ref[...] = y.astype(o_ref.dtype)


def _choose_tm(n_rows, tm_max):
    # Enough steps to respect tm_max; >= 2 steps on large inputs (v7x megacore); tm a
    # multiple of 8; tm ~= N/steps so the ragged trailing block stays nearly full.
    n_rows = max(int(n_rows), 1)
    steps = max(_cdiv(n_rows, tm_max), 2 if n_rows > 1024 else 1)
    return _round_up(_cdiv(n_rows, steps), 8)


def mel_prenet(x, w1, w2, mask=None, *, tm_max=8192):
    """x: (B, T, d_model); w1: (d_model, d_mel); w2: (d_mel, d_model);
    mask: (B, T) bool or None.  Returns (B, T, d_model) in x.dtype.
    x / w1 / w2 may be float32 or bfloat16 (bf16 recommended in production);
    all math is accumulated / evaluated in float32."""
    B, T, d_model = x.shape
    d_mel = w1.shape[1]
    assert w1.shape == (d_model, d_mel) and w2.shape == (d_mel, d_model)
    N = B * T

    tm = _choose_tm(N, tm_max)
    grid = _cdiv(N, tm)

    x2 = x.reshape(N, d_model)       # free (contiguous); no padding, no extra HBM pass

    x_item = jnp.dtype(x.dtype).itemsize
    w_item = jnp.dtype(w1.dtype).itemsize
    cost = pl.CostEstimate(
        flops=4 * N * d_model * d_mel,                       # two matmuls
        transcendentals=2 * N * (d_model + d_mel),           # exp + rcp per element
        bytes_accessed=(2 * N * d_model * x_item             # x in, y out
                        + 2 * d_model * d_mel * w_item       # both weights (fetched once)
                        + (N * 4 if mask is not None else 0)),
    )

    in_specs = [
        pl.BlockSpec((tm, d_model), lambda i: (i, 0)),
        pl.BlockSpec((d_model, d_mel), lambda i: (0, 0)),   # constant index -> fetched once
        pl.BlockSpec((d_mel, d_model), lambda i: (0, 0)),
    ]
    operands = [x2, w1, w2]
    kernel = _mel_prenet_kernel
    if mask is not None:
        keep = 1.0 - mask.reshape(N, 1).astype(jnp.float32)
        in_specs.append(pl.BlockSpec((tm, 1), lambda i: (i, 0)))
        operands.append(keep)
        kernel = _mel_prenet_kernel_masked

    out = pl.pallas_call(
        kernel,
        out_shape=jax.ShapeDtypeStruct((N, d_model), x.dtype),
        grid_spec=pltpu.PrefetchScalarGridSpec(
            num_scalar_prefetch=0,
            grid=(grid,),
            in_specs=in_specs,
            out_specs=pl.BlockSpec((tm, d_model), lambda i: (i, 0)),
        ),
        compiler_params=pltpu.CompilerParams(
            dimension_semantics=("parallel",),
            vmem_limit_bytes=32 * 1024 * 1024),
        cost_estimate=cost,
    )(*operands)

    return out.reshape(B, T, d_model)


def _ref_forward(x, w1, w2, mask):
    # pure-JAX reference (PyTorch eval-mode semantics, exact mish)
    def mish(v):
        return v * jnp.tanh(jax.nn.softplus(v))
    h = mish(x @ w1)
    y = mish(h @ w2)
    if mask is not None:
        y = jnp.where(mask[..., None], 0.0, y)
    return y


if __name__ == "__main__":
    # small shapes consistent with the module: batch=2, seq=8,
    # transformer.encoder_hidden (d_model)=32, melencoder.encoder_hidden=64
    B, T, d_model, d_mel = 2, 8, 32, 64

    key = jax.random.PRNGKey(0)
    kx, k1, k2, km = jax.random.split(key, 4)

    x = jax.random.normal(kx, (B, T, d_model), jnp.float32)

    # deterministic param init (PyTorch Linear default: U(-1/sqrt(fan_in), +1/sqrt(fan_in)))
    b1 = 1.0 / jnp.sqrt(jnp.float32(d_model))
    b2 = 1.0 / jnp.sqrt(jnp.float32(d_mel))
    w1 = jax.random.uniform(k1, (d_model, d_mel), jnp.float32, -b1, b1)
    w2 = jax.random.uniform(k2, (d_mel, d_model), jnp.float32, -b2, b2)

    mask = jax.random.bernoulli(km, 0.3, (B, T))  # True -> zero out that position

    ref = _ref_forward(x, w1, w2, mask)
    ref_nomask = _ref_forward(x, w1, w2, None)

    # f32 path, with mask
    out = jax.block_until_ready(mel_prenet(x, w1, w2, mask))
    assert out.shape == (B, T, d_model)
    assert jnp.allclose(out, ref, atol=1e-2, rtol=1e-2), "f32 masked path mismatch"

    # f32 path, mask=None (exercises the keep-free kernel)
    out_nm = jax.block_until_ready(mel_prenet(x, w1, w2, None))
    assert jnp.allclose(out_nm, ref_nomask, atol=1e-2, rtol=1e-2), "f32 no-mask path mismatch"

    # bf16 I/O path (production / bandwidth-optimized), compute still in f32
    out_bf16 = jax.block_until_ready(
        mel_prenet(x.astype(jnp.bfloat16), w1.astype(jnp.bfloat16),
                   w2.astype(jnp.bfloat16), mask))
    assert out_bf16.dtype == jnp.bfloat16
    assert jnp.allclose(out_bf16.astype(jnp.float32), ref, atol=1e-1, rtol=1e-1), \
        "bf16 path mismatch vs reference"

    print("KERNEL_OK")
</pallas_src>

<mosaic_0001>
module attributes {stable_mosaic.version = 11 : i64} {
  func.func @_mel_prenet_kernel_masked(%arg0: i32, %arg1: memref<16x32xf32, #tpu.memory_space<vmem>>, %arg2: memref<32x64xf32, #tpu.memory_space<vmem>>, %arg3: memref<64x32xf32, #tpu.memory_space<vmem>>, %arg4: memref<16x1xf32, #tpu.memory_space<vmem>>, %arg5: memref<16x32xf32, #tpu.memory_space<vmem>>) attributes {dimension_semantics = [#tpu.dimension_semantics<parallel>], iteration_bounds = array<i64: 1>, scalar_prefetch = 0 : i64, scratch_operands = 0 : i64, tpu.core_type = #tpu.core_type<tc>, window_params = [{transform_indices = @transform_0, window_bounds = array<i64: 16, 32>}, {pipeline_mode = #tpu.pipeline_mode<synchronous>, transform_indices = @transform_1, window_bounds = array<i64: 32, 64>}, {pipeline_mode = #tpu.pipeline_mode<synchronous>, transform_indices = @transform_2, window_bounds = array<i64: 64, 32>}, {transform_indices = @transform_3, window_bounds = array<i64: 16, 1>}, {transform_indices = @transform_4, window_bounds = array<i64: 16, 32>}]} {
    %c0 = arith.constant 0 : index
    %c0_0 = arith.constant 0 : index
    %0 = vector.load %arg1[%c0, %c0_0] : memref<16x32xf32, #tpu.memory_space<vmem>>, vector<16x32xf32>
    %c0_1 = arith.constant 0 : index
    %c0_2 = arith.constant 0 : index
    %1 = vector.load %arg2[%c0_1, %c0_2] : memref<32x64xf32, #tpu.memory_space<vmem>>, vector<32x64xf32>
    %cst = arith.constant dense<0.000000e+00> : vector<16x64xf32>
    %2 = tpu.matmul %0, %1, %cst {dimension_numbers = #tpu.dot_dimension_numbers<[1], [0], [0], [1], [0, 0, 1, 1], [], []>} : vector<16x32xf32>, vector<32x64xf32>, vector<16x64xf32> -> vector<16x64xf32>
    %cst_3 = arith.constant 2.000000e+01 : f32
    %3 = vector.broadcast %cst_3 : f32 to vector<16x64xf32>
    %4 = arith.minimumf %2, %3 : vector<16x64xf32>
    %5 = math.exp %4 : vector<16x64xf32>
    %cst_4 = arith.constant 2.000000e+00 : f32
    %6 = vector.broadcast %cst_4 : f32 to vector<16x64xf32>
    %7 = arith.addf %5, %6 : vector<16x64xf32>
    %8 = arith.mulf %5, %7 : vector<16x64xf32>
    %cst_5 = arith.constant 2.000000e+00 : f32
    %9 = vector.broadcast %cst_5 : f32 to vector<16x64xf32>
    %10 = arith.addf %8, %9 : vector<16x64xf32>
    %11 = tpu.reciprocal %10 {approx = true} : vector<16x64xf32> -> vector<16x64xf32>
    %12 = arith.mulf %8, %11 : vector<16x64xf32>
    %cst_6 = arith.constant 2.000000e+01 : f32
    %13 = vector.broadcast %cst_6 : f32 to vector<16x64xf32>
    %14 = arith.cmpf ogt, %2, %13 : vector<16x64xf32>
    %15 = arith.mulf %2, %12 : vector<16x64xf32>
    %16 = arith.select %14, %2, %15 : vector<16x64xi1>, vector<16x64xf32>
    %c0_7 = arith.constant 0 : index
    %c0_8 = arith.constant 0 : index
    %17 = vector.load %arg3[%c0_7, %c0_8] : memref<64x32xf32, #tpu.memory_space<vmem>>, vector<64x32xf32>
    %cst_9 = arith.constant dense<0.000000e+00> : vector<16x32xf32>
    %18 = tpu.matmul %16, %17, %cst_9 {dimension_numbers = #tpu.dot_dimension_numbers<[1], [0], [0], [1], [0, 0, 1, 1], [], []>} : vector<16x64xf32>, vector<64x32xf32>, vector<16x32xf32> -> vector<16x32xf32>
    %cst_10 = arith.constant 2.000000e+01 : f32
    %19 = vector.broadcast %cst_10 : f32 to vector<16x32xf32>
    %20 = arith.minimumf %18, %19 : vector<16x32xf32>
    %21 = math.exp %20 : vector<16x32xf32>
    %cst_11 = arith.constant 2.000000e+00 : f32
    %22 = vector.broadcast %cst_11 : f32 to vector<16x32xf32>
    %23 = arith.addf %21, %22 : vector<16x32xf32>
    %24 = arith.mulf %21, %23 : vector<16x32xf32>
    %cst_12 = arith.constant 2.000000e+00 : f32
    %25 = vector.broadcast %cst_12 : f32 to vector<16x32xf32>
    %26 = arith.addf %24, %25 : vector<16x32xf32>
    %27 = tpu.reciprocal %26 {approx = true} : vector<16x32xf32> -> vector<16x32xf32>
    %28 = arith.mulf %24, %27 : vector<16x32xf32>
    %cst_13 = arith.constant 2.000000e+01 : f32
    %29 = vector.broadcast %cst_13 : f32 to vector<16x32xf32>
    %30 = arith.cmpf ogt, %18, %29 : vector<16x32xf32>
    %31 = arith.mulf %18, %28 : vector<16x32xf32>
    %32 = arith.select %30, %18, %31 : vector<16x32xi1>, vector<16x32xf32>
    %c0_14 = arith.constant 0 : index
    %c0_15 = arith.constant 0 : index
    %33 = vector.load %arg4[%c0_14, %c0_15] : memref<16x1xf32, #tpu.memory_space<vmem>>, vector<16x1xf32>
    %34 = vector.broadcast %33 : vector<16x1xf32> to vector<16x32xf32>
    %35 = arith.mulf %32, %34 : vector<16x32xf32>
    %c0_16 = arith.constant 0 : index
    %c0_17 = arith.constant 0 : index
    %36 = vector.load %arg5[%c0_16, %c0_17] : memref<16x32xf32, #tpu.memory_space<vmem>>, vector<16x32xf32>
    tpu.vector_store %arg5[%c0_16, %c0_17], %35 {strides = array<i32>} : memref<16x32xf32, #tpu.memory_space<vmem>>, vector<16x32xf32>,
    return
  }
  func.func @transform_0(%arg0: i32) -> (i32, i32) {
    %c0_i32 = arith.constant 0 : i32
    %c0_i32_0 = arith.constant 0 : i32
    return %arg0, %c0_i32 : i32, i32
  }
  func.func @transform_1(%arg0: i32) -> (i32, i32) {
    %c0_i32 = arith.constant 0 : i32
    %c0_i32_0 = arith.constant 0 : i32
    %c0_i32_1 = arith.constant 0 : i32
    return %c0_i32, %c0_i32_0 : i32, i32
  }
  func.func @transform_2(%arg0: i32) -> (i32, i32) {
    %c0_i32 = arith.constant 0 : i32
    %c0_i32_0 = arith.constant 0 : i32
    %c0_i32_1 = arith.constant 0 : i32
    return %c0_i32, %c0_i32_0 : i32, i32
  }
  func.func @transform_3(%arg0: i32) -> (i32, i32) {
    %c0_i32 = arith.constant 0 : i32
    %c0_i32_0 = arith.constant 0 : i32
    return %arg0, %c0_i32 : i32, i32
  }
  func.func @transform_4(%arg0: i32) -> (i32, i32) {
    %c0_i32 = arith.constant 0 : i32
    %c0_i32_0 = arith.constant 0 : i32
    return %arg0, %c0_i32 : i32, i32
  }
}

</mosaic_0001>

<bundles_post_ra>
// kernel: tpu_custom_call.1
= control target key start
LH: loop header
LB: loop body
LE: loop exit
PB: predicated region body
PF: predicated region fallthrough
CT: control target
= control target key end

     0   :  { %s317_s0 = inlined_call_operand.vmem [shape: f32[16,32], index: 0, kind: input, shape index: {}]   ;;  %s318_s1 = inlined_call_operand.vmem [shape: f32[32,64], index: 1, kind: input, shape index: {}]   ;;  %s319_s2 = inlined_call_operand.vmem [shape: f32[64,32], index: 2, kind: input, shape index: {}]   ;;  %s320_s3 = inlined_call_operand.vmem [shape: f32[16,1], index: 3, kind: input, shape index: {}]   ;;  %s321_s4 = inlined_call_operand.hbm [shape: f32[16,32], index: 4, kind: output, shape index: {}]  }
   0x1   :  { %v23_v0 = vld [vmem:[%s318_s1 + $0x18] sm:$0xff]  ;;  %v22_v1 = vld [vmem:[%s318_s1 + $0x10] sm:$0xff]  ;;  %v21_v2 = vld [vmem:[%s318_s1 + $0x8] sm:$0xff] }
   0x2   :  { %43 = vmatpush.msra.mxu0 %v23_v0  ;;  %174 = vmatpush.msra.mxu3 %v23_v0 }
   0x3   :  { %9 = vsyncpa [#allocation3], 0  ;;  %v20_v3 = vld [vmem:[%s318_s1] sm:$0xff]  ;;  %vm24_vm0 = vcmask 261120   ;;  %v19_v5 = vld [vmem:[%s317_s0 + $0x8] sm:$0xff]  ;;  %v233_v18 = vmov 0  }
   0x4   :  { %44 = vmatpush.msra.mxu0 %v22_v1  ;;  %175 = vmatpush.msra.mxu3 %v22_v1  ;;  %v18_v4 = vld [vmem:[%s317_s0] sm:$0xff]  ;;  %v83_v6 = vld [vmem:[%s319_s2 + $0x38] sm:$0xff]  ;;  %v82_v7 = vld [vmem:[%s319_s2 + $0x30] sm:$0xff]  ;;  %vm84_vm1 = vcmask 523264   ;;  %s158_s21 = sshll.u32 %s321_s4, 4  ;;  %s235_s22 = smov 128   ;;  %s159_s21 = int_to_ptr.hbm [resolvable:$true] %s158_s21 }
   0x5   :  { %99 = vmatpush.msra.mxu1 %v83_v6  ;;  %178 = vmatpush.msra.mxu2 %v83_v6  ;;  %v81_v8 = vld [vmem:[%s319_s2 + $0x28] sm:$0xff]  ;;  %v80_v9 = vld [vmem:[%s319_s2 + $0x20] sm:$0xff]  ;;  %v79_v10 = vld [vmem:[%s319_s2 + $0x18] sm:$0xff]  ;;  %s236_s23 = smov 8  }
   0x6   :  { %45 = vmatpush.msra.mxu0 %v21_v2  ;;  %176 = vmatpush.msra.mxu3 %v21_v2  ;;  %v78_v11 = vld [vmem:[%s319_s2 + $0x10] sm:$0xff]  ;;  %v77_v12 = vld [vmem:[%s319_s2 + $0x8] sm:$0xff]  ;;  %v76_v13 = vld [vmem:[%s319_s2] sm:$0xff] }
   0x7   :  { %100 = vmatpush.msra.mxu1 %v82_v7  ;;  %179 = vmatpush.msra.mxu2 %v82_v7  ;;  %v136_v17 = vld [vmem:[%s320_s3] sm:$0xff]  ;;  %v137_v23 = vld [vmem:[%s320_s3 + $0x8] sm:$0xff]  ;;  %s234_s3 = smov [#allocation2]  }
   0x8   :  { %46 = vmatpush.msra.mxu0 %v20_v3  ;;  %177 = vmatpush.msra.mxu3 %v20_v3  ;;  %s156_s18 = sshll.u32 %s234_s3, 4  ;;  %s157_s18 = int_to_ptr.vmem [resolvable:$true] %s156_s18 }
   0x9   :  { %170 = vmatmul.msk.f32.vlgmr.msra.gmra.mxu0 %vm24_vm0, %v18_v4  ;;  %171 = vmatmul.msk.f32.vlgmr.msra.gmra.mxu3 %vm24_vm0, %v19_v5 }
   0xa   :  { %101 = vmatpush.msra.mxu1 %v81_v8  ;;  %180 = vmatpush.msra.mxu2 %v81_v8 }
   0xb   :  { %190 = vset.pattern.permute.xlu0 %v233_v18 }
   0xc   :  { %102 = vmatpush.msra.mxu1 %v80_v9  ;;  %181 = vmatpush.msra.mxu2 %v80_v9 }
   0xd   :  { %140 = vperm.xlu0 %190, %v136_v17  }
   0xe   :  { %103 = vmatpush.msra.mxu1 %v79_v10  ;;  %182 = vmatpush.msra.mxu2 %v79_v10 }
  0x10   :  { %104 = vmatpush.msra.mxu1 %v78_v11  ;;  %183 = vmatpush.msra.mxu2 %v78_v11 }
  0x12   :  { %105 = vmatpush.msra.mxu1 %v77_v12  ;;  %184 = vmatpush.msra.mxu2 %v77_v12 }
  0x14   :  { %106 = vmatpush.msra.mxu1 %v76_v13  ;;  %185 = vmatpush.msra.mxu2 %v76_v13 }
  0x15   :  { %145 = vperm.xlu0 %190, %v137_v23  }
  0x7f   :  { %v141_v56 = vpop.permute.xlu0 %140 }
  0x86   :  { %v48_v14 = vpop.f32.mrf.mxu0 }
  0x87   :  { %v54_v15 = vmin.f32 %v48_v14, 20.0  ;;  %vm70_vm2 = vcmp.gt.f32.partialorder %v48_v14, 20.0  ;;  %v146_v62 = vpop.permute.xlu0 %145 }
  0x89   :  { %v56_v16 = vmul.f32 1.442695, %v54_v15 }
  0x8b   :  { %191 = vpow2.f32 %v56_v16 }
  0x8c   :  { %v51_v19 = vpop.f32.mrf.mxu3 }
  0x8d   :  { %v55_v20 = vmin.f32 %v51_v19, 20.0  ;;  %vm71_vm3 = vcmp.gt.f32.partialorder %v51_v19, 20.0 }
  0x8f   :  { %v58_v21 = vmul.f32 1.442695, %v55_v20 }
  0x91   :  { %v192_v22 = vpop.eup %191  ;;  %193 = vpow2.f32 %v58_v21 }
  0x92   :  { %v60_v24 = vadd.f32 2.0, %v192_v22 }
  0x94   :  { %v62_v25 = vmul.f32 %v192_v22, %v60_v24 }
  0x96   :  { %v64_v26 = vadd.f32 2.0, %v62_v25 }
  0x97   :  { %v194_v27 = vpop.eup %193 }
  0x98   :  { %195 = vrcp.f32 %v64_v26  ;;  %v61_v28 = vadd.f32 2.0, %v194_v27 }
  0x9a   :  { %v63_v29 = vmul.f32 %v194_v27, %v61_v28 }
  0x9c   :  { %v65_v30 = vadd.f32 2.0, %v63_v29 }
  0x9e   :  { %v196_v31 = vpop.eup %195  ;;  %197 = vrcp.f32 %v65_v30 }
  0x9f   :  { %v68_v32 = vmul.f32 %v196_v31, %v62_v25 }
  0xa1   :  { %v72_v33 = vmul.f32 %v68_v32, %v48_v14 }
  0xa3   :  { %v74_v34 = vsel %vm70_vm2, %v48_v14, %v72_v33 }
  0xa4   :  { %v198_v35 = vpop.eup %197  ;;  %172 = vmatmul.msk.f32.vlgmr.msra.gmra.mxu1 %vm84_vm1, %v74_v34 }
  0xa5   :  { %v69_v36 = vmul.f32 %v198_v35, %v63_v29 }
  0xa7   :  { %v73_v37 = vmul.f32 %v69_v36, %v51_v19 }
  0xa9   :  { %v75_v38 = vsel %vm71_vm3, %v51_v19, %v73_v37 }
  0xaa   :  { %173 = vmatmul.msk.f32.vlgmr.msra.gmra.mxu2 %vm84_vm1, %v75_v38 }
 0x121   :  { %v108_v39 = vpop.f32.mrf.mxu1 }
 0x122   :  { %v114_v40 = vmin.f32 %v108_v39, 20.0  ;;  %vm130_vm4 = vcmp.gt.f32.partialorder %v108_v39, 20.0 }
 0x124   :  { %v116_v41 = vmul.f32 1.442695, %v114_v40 }
 0x126   :  { %199 = vpow2.f32 %v116_v41 }
 0x12c   :  { %v200_v42 = vpop.eup %199 }
 0x12d   :  { %v120_v43 = vadd.f32 2.0, %v200_v42  ;;  %v111_v44 = vpop.f32.mrf.mxu2 }
 0x12e   :  { %v115_v45 = vmin.f32 %v111_v44, 20.0  ;;  %vm131_vm5 = vcmp.gt.f32.partialorder %v111_v44, 20.0 }
 0x12f   :  { %v122_v46 = vmul.f32 %v200_v42, %v120_v43 }
 0x130   :  { %v118_v47 = vmul.f32 1.442695, %v115_v45 }
 0x131   :  { %v124_v48 = vadd.f32 2.0, %v122_v46 }
 0x132   :  { %201 = vpow2.f32 %v118_v47 }
 0x133   :  { %203 = vrcp.f32 %v124_v48 }
 0x138   :  { %v202_v49 = vpop.eup %201 }
 0x139   :  { %v204_v50 = vpop.eup %203  ;;  %v121_v51 = vadd.f32 2.0, %v202_v49 }
 0x13a   :  { %v128_v52 = vmul.f32 %v204_v50, %v122_v46 }
 0x13b   :  { %v123_v53 = vmul.f32 %v202_v49, %v121_v51 }
 0x13c   :  { %v132_v54 = vmul.f32 %v128_v52, %v108_v39 }
 0x13d   :  { %v125_v55 = vadd.f32 2.0, %v123_v53 }
 0x13e   :  { %v134_v57 = vsel %vm130_vm4, %v108_v39, %v132_v54 }
 0x13f   :  { %205 = vrcp.f32 %v125_v55  ;;  %v148_v58 = vmul.f32 %v141_v56, %v134_v57 }
 0x141   :  { %150 = vst.msk [vmem:[#allocation2] sm:$0xff] %vm24_vm0, %v148_v58 }
 0x145   :  { %v206_v59 = vpop.eup %205 }
 0x146   :  { %v129_v60 = vmul.f32 %v206_v59, %v123_v53 }
 0x148   :  { %v133_v61 = vmul.f32 %v129_v60, %v111_v44 }
 0x14a   :  { %v135_v63 = vsel %vm131_vm5, %v111_v44, %v133_v61 }
 0x14b   :  { %v149_v0 = vmul.f32 %v146_v62, %v135_v63 }
 0x14d   :  { %151 = vst.msk [vmem:[#allocation2 + $0x8] sm:$0xff] %vm24_vm0, %v149_v0 }
 0x14e   :  { %164 = dma.vmem_to_hbm [thread:$0]  %s157_s18, 256, %s159_s21, [#allocation3], %s235_s22, %s235_s22, %s236_s23  }
 0x14f   :  { %231 = dma.done.wait [#allocation3], 256  }
 0x150   :  { %232 = vsyncadd [#allocation3], 4294967040 }
 0x151   :  { %169 = vsyncpa [#allocation3], 1 }

</bundles_post_ra>
